<compile_context>
chip_gen: v7x
topology: tpu7x:2x2x1
jax: 0.10.0
libtpu: 0.0.40
codegen_flags: <defaults>
</compile_context>

<pallas_src>
import functools
import math

import jax
import jax.numpy as jnp
from jax.experimental import pallas as pl
from jax.experimental.pallas import tpu as pltpu

LANE = 128   # lane width (last dim)
SUBLANE = 8  # f32 sublane count (second-to-last dim)


def _round_up(x, m):
    return ((x + m - 1) // m) * m


# --------------------------------------------------------------------------
# Kernel: all layers fused, activation never leaves VMEM between layers.
# refs = (x_ref, w0, b0, w1, b1, ..., w_{L-1}, b_{L-1}, o_ref)
#   x_ref : [tm, K0p]   (f32, lane-dense padded input features)
#   w_i   : [Kip, Nip]  (bf16, pre-transposed [in, out], zero-padded to 128)
#   b_i   : [1,  Nip]   (f32)
#   o_ref : [tm, N_{L-1}p]
# --------------------------------------------------------------------------
def _ffn_fused_kernel(*refs, num_layers: int):
    x_ref = refs[0]
    o_ref = refs[1 + 2 * num_layers]

    h = x_ref[...]
    for li in range(num_layers):
        w_ref = refs[1 + 2 * li]
        b_ref = refs[2 + 2 * li]
        # Bias folded into the f32 accumulator init; bf16 x bf16 -> f32 on MXU.
        acc = b_ref[...].astype(jnp.float32)
        acc = acc + jnp.dot(h.astype(w_ref.dtype), w_ref[...],
                            preferred_element_type=jnp.float32)
        # ReLU only after the middle layers (matches the nn.Sequential:
        # no activation after the first Linear, none after the last).
        if 0 < li < num_layers - 1:
            acc = jnp.maximum(acc, 0.0)
        h = acc

    o_ref[...] = h.astype(o_ref.dtype)


# --------------------------------------------------------------------------
# One-time parameter preparation (hoisted out of the forward pass).
# --------------------------------------------------------------------------
def prepare_feedforward_params(params, weight_dtype=jnp.bfloat16):
    """Pad every layer to lane-dense (multiples of 128) and cast weights to the
    kernel storage dtype. Call ONCE; reuse the result for every forward."""
    layers = []
    for (W, b) in params:
        fi, fo = W.shape
        fip, fop = _round_up(fi, LANE), _round_up(fo, LANE)
        Wp = jnp.zeros((fip, fop), weight_dtype).at[:fi, :fo].set(
            W.astype(weight_dtype))
        bp = jnp.zeros((1, fop), jnp.float32).at[:, :fo].set(
            b.reshape(1, fo).astype(jnp.float32))
        layers.append((Wp, bp))
    return {
        "layers": layers,
        "in_features": params[0][0].shape[0],
        "out_features": params[-1][0].shape[1],
    }


def _choose_tm(M, Kp, Np, max_nip, tile_vmem_budget=8 << 20):
    """Batch tile size. Weights are grid-invariant, so per-step cost is only
    x/out tile DMA + ~0.35us overhead: prefer large tiles, but keep >=2 grid
    steps for M > 128 so the parallel axis spans both v7x TensorCores."""
    if M <= 128:
        return _round_up(max(M, 1), SUBLANE)
    # Per-row VMEM: double-buffered x/out tiles + live f32 activation/accum.
    per_row = 4 * (2 * Kp + 2 * Np + 2 * max_nip)
    cap = max(SUBLANE, (tile_vmem_budget // per_row) // SUBLANE * SUBLANE)
    for cand in (512, 256, 128):
        if cand <= cap and M >= 2 * cand:
            return cand
    return min(128, cap)


def _const_block_spec(shape, single_buffer):
    """BlockSpec for a grid-invariant (weight/bias) input."""
    if single_buffer:
        # Constant block index -> double-buffering buys nothing; halve VMEM.
        return pl.BlockSpec(shape, lambda i: (0, 0),
                            pipeline_mode=pl.Buffered(1))
    return pl.BlockSpec(shape, lambda i: (0, 0))


# --------------------------------------------------------------------------
# Forward pass: one fused pallas_call.
# --------------------------------------------------------------------------
def feedforward_forward(x, prepared):
    layers = prepared["layers"]
    num_layers = len(layers)
    out_features = prepared["out_features"]

    M, K = x.shape
    assert K == prepared["in_features"]

    Kp = layers[0][0].shape[0]
    Np = layers[-1][0].shape[1]
    max_nip = max(W.shape[1] for W, _ in layers)

    tm = _choose_tm(M, Kp, Np, max_nip)
    Mp = _round_up(M, tm)

    # Skip the input pad/copy when shapes are already aligned.
    if Mp == M and Kp == K:
        xp = x
    else:
        xp = jnp.zeros((Mp, Kp), x.dtype).at[:M, :K].set(x)

    flat_inputs = [xp]
    for (Wp, bp) in layers:
        flat_inputs.append(Wp)
        flat_inputs.append(bp)

    kernel = functools.partial(_ffn_fused_kernel, num_layers=num_layers)

    # VMEM budget estimate (assume worst case 2x-buffered weights) + headroom.
    weight_bytes = sum(int(W.size) * W.dtype.itemsize +
                       int(b.size) * b.dtype.itemsize for W, b in layers)
    tile_bytes = 4 * tm * (2 * Kp + 2 * Np + 2 * max_nip)
    est = 2 * weight_bytes + tile_bytes
    vmem_limit = int(min(max(2 * est, 32 << 20), 100 << 20))

    flops = 2 * Mp * sum(W.shape[0] * W.shape[1] for W, _ in layers)
    bytes_accessed = (weight_bytes
                      + int(xp.size) * xp.dtype.itemsize
                      + Mp * Np * x.dtype.itemsize)
    cost = pl.CostEstimate(flops=int(flops), transcendentals=0,
                           bytes_accessed=int(bytes_accessed))

    def _call(single_buffer):
        in_specs = [pl.BlockSpec((tm, Kp), lambda i: (i, 0))]
        for (Wp, bp) in layers:
            in_specs.append(_const_block_spec(Wp.shape, single_buffer))
            in_specs.append(_const_block_spec(bp.shape, single_buffer))
        return pl.pallas_call(
            kernel,
            out_shape=jax.ShapeDtypeStruct((Mp, Np), x.dtype),
            grid=(Mp // tm,),
            in_specs=in_specs,
            out_specs=pl.BlockSpec((tm, Np), lambda i: (i, 0)),
            compiler_params=pltpu.CompilerParams(
                dimension_semantics=("parallel",),
                vmem_limit_bytes=vmem_limit,
            ),
            cost_estimate=cost,
        )(*flat_inputs)

    try:
        out_padded = _call(single_buffer=hasattr(pl, "Buffered"))
    except Exception:
        # Fallback for jax versions that reject pipeline_mode / Buffered(1):
        # identical semantics, default double-buffering of weights.
        out_padded = _call(single_buffer=False)

    if Mp == M and Np == out_features:
        return out_padded
    return out_padded[:M, :out_features]


# --------------------------------------------------------------------------
# Init matching PyTorch nn.Linear default U(-1/sqrt(fan_in), 1/sqrt(fan_in)).
# Weights stored [in, out] (transposed vs PyTorch's [out, in]).
# --------------------------------------------------------------------------
def init_feedforward_params(key, input_size, output_size, num_layers, layer_dim,
                            dtype=jnp.float32):
    assert num_layers >= 2
    dims = [input_size] + [layer_dim] * (num_layers - 1) + [output_size]
    params = []
    for fan_in, fan_out in zip(dims[:-1], dims[1:]):
        key, kw, kb = jax.random.split(key, 3)
        bound = 1.0 / math.sqrt(fan_in)
        W = jax.random.uniform(kw, (fan_in, fan_out), dtype=dtype,
                               minval=-bound, maxval=bound)
        b = jax.random.uniform(kb, (fan_out,), dtype=dtype,
                               minval=-bound, maxval=bound)
        params.append((W, b))
    return params


def reference_forward(x, params):
    n = len(params)
    h = x @ params[0][0] + params[0][1]
    for W, b in params[1:n - 1]:
        h = jnp.maximum(h @ W + b, 0.0)
    h = h @ params[n - 1][0] + params[n - 1][1]
    return h


if __name__ == "__main__":
    batch = 8
    input_size = 32
    layer_dim = 64
    output_size = 16
    num_layers = 4  # -> Linear, (Linear+ReLU), (Linear+ReLU), Linear

    key = jax.random.PRNGKey(0)
    key, kx = jax.random.split(key)
    x = jax.random.normal(kx, (batch, input_size), dtype=jnp.float32)

    params = init_feedforward_params(key, input_size, output_size,
                                     num_layers, layer_dim)

    # One-time prepare (padding + bf16 cast), then a single fused forward.
    prepared = prepare_feedforward_params(params, weight_dtype=jnp.bfloat16)
    out = feedforward_forward(x, prepared)
    out = jax.block_until_ready(out)

    # Reference with the same bf16-quantized weights (f32 math), so the only
    # remaining delta is the kernel's bf16 activation feed / MXU rounding.
    quant_params = [(W.astype(jnp.bfloat16).astype(jnp.float32), b)
                    for (W, b) in params]
    ref = reference_forward(x, quant_params)

    assert out.shape == (batch, output_size)
    max_err = float(jnp.max(jnp.abs(out - ref)))
    assert jnp.allclose(out, ref, atol=2e-2, rtol=2e-2), \
        f"mismatch vs reference (max abs err {max_err})"

    print("KERNEL_OK")
</pallas_src>

<mosaic_0001>
module attributes {stable_mosaic.version = 11 : i64} {
  func.func @_ffn_fused_kernel(%arg0: i32, %arg1: memref<8x128xf32, #tpu.memory_space<vmem>>, %arg2: memref<128x128xbf16, #tpu.memory_space<vmem>>, %arg3: memref<1x128xf32, #tpu.memory_space<vmem>>, %arg4: memref<128x128xbf16, #tpu.memory_space<vmem>>, %arg5: memref<1x128xf32, #tpu.memory_space<vmem>>, %arg6: memref<128x128xbf16, #tpu.memory_space<vmem>>, %arg7: memref<1x128xf32, #tpu.memory_space<vmem>>, %arg8: memref<128x128xbf16, #tpu.memory_space<vmem>>, %arg9: memref<1x128xf32, #tpu.memory_space<vmem>>, %arg10: memref<8x128xf32, #tpu.memory_space<vmem>>) attributes {dimension_semantics = [#tpu.dimension_semantics<parallel>], iteration_bounds = array<i64: 1>, scalar_prefetch = 0 : i64, scratch_operands = 0 : i64, tpu.core_type = #tpu.core_type<tc>, window_params = [{transform_indices = @transform_0, window_bounds = array<i64: 8, 128>}, {pipeline_mode = #tpu.pipeline_mode<synchronous>, transform_indices = @transform_1, window_bounds = array<i64: 128, 128>}, {pipeline_mode = #tpu.pipeline_mode<synchronous>, transform_indices = @transform_2, window_bounds = array<i64: 1, 128>}, {pipeline_mode = #tpu.pipeline_mode<synchronous>, transform_indices = @transform_3, window_bounds = array<i64: 128, 128>}, {pipeline_mode = #tpu.pipeline_mode<synchronous>, transform_indices = @transform_4, window_bounds = array<i64: 1, 128>}, {pipeline_mode = #tpu.pipeline_mode<synchronous>, transform_indices = @transform_5, window_bounds = array<i64: 128, 128>}, {pipeline_mode = #tpu.pipeline_mode<synchronous>, transform_indices = @transform_6, window_bounds = array<i64: 1, 128>}, {pipeline_mode = #tpu.pipeline_mode<synchronous>, transform_indices = @transform_7, window_bounds = array<i64: 128, 128>}, {pipeline_mode = #tpu.pipeline_mode<synchronous>, transform_indices = @transform_8, window_bounds = array<i64: 1, 128>}, {transform_indices = @transform_9, window_bounds = array<i64: 8, 128>}]} {
    %c0 = arith.constant 0 : index
    %c0_0 = arith.constant 0 : index
    %0 = vector.load %arg1[%c0, %c0_0] : memref<8x128xf32, #tpu.memory_space<vmem>>, vector<8x128xf32>
    %c0_1 = arith.constant 0 : index
    %c0_2 = arith.constant 0 : index
    %1 = vector.load %arg3[%c0_1, %c0_2] : memref<1x128xf32, #tpu.memory_space<vmem>>, vector<1x128xf32>
    %2 = arith.truncf %0 : vector<8x128xf32> to vector<8x128xbf16>
    %c0_3 = arith.constant 0 : index
    %c0_4 = arith.constant 0 : index
    %3 = vector.load %arg2[%c0_3, %c0_4] : memref<128x128xbf16, #tpu.memory_space<vmem>>, vector<128x128xbf16>
    %cst = arith.constant dense<0.000000e+00> : vector<8x128xf32>
    %4 = tpu.matmul %2, %3, %cst {dimension_numbers = #tpu.dot_dimension_numbers<[1], [0], [0], [1], [0, 0, 1, 1], [], []>} : vector<8x128xbf16>, vector<128x128xbf16>, vector<8x128xf32> -> vector<8x128xf32>
    %5 = vector.broadcast %1 : vector<1x128xf32> to vector<8x128xf32>
    %6 = arith.addf %5, %4 : vector<8x128xf32>
    %c0_5 = arith.constant 0 : index
    %c0_6 = arith.constant 0 : index
    %7 = vector.load %arg5[%c0_5, %c0_6] : memref<1x128xf32, #tpu.memory_space<vmem>>, vector<1x128xf32>
    %8 = arith.truncf %6 : vector<8x128xf32> to vector<8x128xbf16>
    %c0_7 = arith.constant 0 : index
    %c0_8 = arith.constant 0 : index
    %9 = vector.load %arg4[%c0_7, %c0_8] : memref<128x128xbf16, #tpu.memory_space<vmem>>, vector<128x128xbf16>
    %cst_9 = arith.constant dense<0.000000e+00> : vector<8x128xf32>
    %10 = tpu.matmul %8, %9, %cst_9 {dimension_numbers = #tpu.dot_dimension_numbers<[1], [0], [0], [1], [0, 0, 1, 1], [], []>} : vector<8x128xbf16>, vector<128x128xbf16>, vector<8x128xf32> -> vector<8x128xf32>
    %11 = vector.broadcast %7 : vector<1x128xf32> to vector<8x128xf32>
    %12 = arith.addf %11, %10 : vector<8x128xf32>
    %cst_10 = arith.constant 0.000000e+00 : f32
    %13 = vector.broadcast %cst_10 : f32 to vector<8x128xf32>
    %14 = arith.maximumf %12, %13 : vector<8x128xf32>
    %c0_11 = arith.constant 0 : index
    %c0_12 = arith.constant 0 : index
    %15 = vector.load %arg7[%c0_11, %c0_12] : memref<1x128xf32, #tpu.memory_space<vmem>>, vector<1x128xf32>
    %16 = arith.truncf %14 : vector<8x128xf32> to vector<8x128xbf16>
    %c0_13 = arith.constant 0 : index
    %c0_14 = arith.constant 0 : index
    %17 = vector.load %arg6[%c0_13, %c0_14] : memref<128x128xbf16, #tpu.memory_space<vmem>>, vector<128x128xbf16>
    %cst_15 = arith.constant dense<0.000000e+00> : vector<8x128xf32>
    %18 = tpu.matmul %16, %17, %cst_15 {dimension_numbers = #tpu.dot_dimension_numbers<[1], [0], [0], [1], [0, 0, 1, 1], [], []>} : vector<8x128xbf16>, vector<128x128xbf16>, vector<8x128xf32> -> vector<8x128xf32>
    %19 = vector.broadcast %15 : vector<1x128xf32> to vector<8x128xf32>
    %20 = arith.addf %19, %18 : vector<8x128xf32>
    %cst_16 = arith.constant 0.000000e+00 : f32
    %21 = vector.broadcast %cst_16 : f32 to vector<8x128xf32>
    %22 = arith.maximumf %20, %21 : vector<8x128xf32>
    %c0_17 = arith.constant 0 : index
    %c0_18 = arith.constant 0 : index
    %23 = vector.load %arg9[%c0_17, %c0_18] : memref<1x128xf32, #tpu.memory_space<vmem>>, vector<1x128xf32>
    %24 = arith.truncf %22 : vector<8x128xf32> to vector<8x128xbf16>
    %c0_19 = arith.constant 0 : index
    %c0_20 = arith.constant 0 : index
    %25 = vector.load %arg8[%c0_19, %c0_20] : memref<128x128xbf16, #tpu.memory_space<vmem>>, vector<128x128xbf16>
    %cst_21 = arith.constant dense<0.000000e+00> : vector<8x128xf32>
    %26 = tpu.matmul %24, %25, %cst_21 {dimension_numbers = #tpu.dot_dimension_numbers<[1], [0], [0], [1], [0, 0, 1, 1], [], []>} : vector<8x128xbf16>, vector<128x128xbf16>, vector<8x128xf32> -> vector<8x128xf32>
    %27 = vector.broadcast %23 : vector<1x128xf32> to vector<8x128xf32>
    %28 = arith.addf %27, %26 : vector<8x128xf32>
    %c0_22 = arith.constant 0 : index
    %c0_23 = arith.constant 0 : index
    %29 = vector.load %arg10[%c0_22, %c0_23] : memref<8x128xf32, #tpu.memory_space<vmem>>, vector<8x128xf32>
    tpu.vector_store %arg10[%c0_22, %c0_23], %28 {strides = array<i32>} : memref<8x128xf32, #tpu.memory_space<vmem>>, vector<8x128xf32>,
    return
  }
  func.func @transform_0(%arg0: i32) -> (i32, i32) {
    %c0_i32 = arith.constant 0 : i32
    %c0_i32_0 = arith.constant 0 : i32
    return %arg0, %c0_i32 : i32, i32
  }
  func.func @transform_1(%arg0: i32) -> (i32, i32) {
    %c0_i32 = arith.constant 0 : i32
    %c0_i32_0 = arith.constant 0 : i32
    %c0_i32_1 = arith.constant 0 : i32
    return %c0_i32, %c0_i32_0 : i32, i32
  }
  func.func @transform_2(%arg0: i32) -> (i32, i32) {
    %c0_i32 = arith.constant 0 : i32
    %c0_i32_0 = arith.constant 0 : i32
    %c0_i32_1 = arith.constant 0 : i32
    return %c0_i32, %c0_i32_0 : i32, i32
  }
  func.func @transform_3(%arg0: i32) -> (i32, i32) {
    %c0_i32 = arith.constant 0 : i32
    %c0_i32_0 = arith.constant 0 : i32
    %c0_i32_1 = arith.constant 0 : i32
    return %c0_i32, %c0_i32_0 : i32, i32
  }
  func.func @transform_4(%arg0: i32) -> (i32, i32) {
    %c0_i32 = arith.constant 0 : i32
    %c0_i32_0 = arith.constant 0 : i32
    %c0_i32_1 = arith.constant 0 : i32
    return %c0_i32, %c0_i32_0 : i32, i32
  }
  func.func @transform_5(%arg0: i32) -> (i32, i32) {
    %c0_i32 = arith.constant 0 : i32
    %c0_i32_0 = arith.constant 0 : i32
    %c0_i32_1 = arith.constant 0 : i32
    return %c0_i32, %c0_i32_0 : i32, i32
  }
  func.func @transform_6(%arg0: i32) -> (i32, i32) {
    %c0_i32 = arith.constant 0 : i32
    %c0_i32_0 = arith.constant 0 : i32
    %c0_i32_1 = arith.constant 0 : i32
    return %c0_i32, %c0_i32_0 : i32, i32
  }
  func.func @transform_7(%arg0: i32) -> (i32, i32) {
    %c0_i32 = arith.constant 0 : i32
    %c0_i32_0 = arith.constant 0 : i32
    %c0_i32_1 = arith.constant 0 : i32
    return %c0_i32, %c0_i32_0 : i32, i32
  }
  func.func @transform_8(%arg0: i32) -> (i32, i32) {
    %c0_i32 = arith.constant 0 : i32
    %c0_i32_0 = arith.constant 0 : i32
    %c0_i32_1 = arith.constant 0 : i32
    return %c0_i32, %c0_i32_0 : i32, i32
  }
  func.func @transform_9(%arg0: i32) -> (i32, i32) {
    %c0_i32 = arith.constant 0 : i32
    %c0_i32_0 = arith.constant 0 : i32
    return %arg0, %c0_i32 : i32, i32
  }
}

module attributes {stable_mosaic.version = 11 : i64} {
  func.func @_ffn_fused_kernel(%arg0: i32, %arg1: memref<8x128xf32, #tpu.memory_space<vmem>>, %arg2: memref<128x128xbf16, #tpu.memory_space<vmem>>, %arg3: memref<1x128xf32, #tpu.memory_space<vmem>>, %arg4: memref<128x128xbf16, #tpu.memory_space<vmem>>, %arg5: memref<1x128xf32, #tpu.memory_space<vmem>>, %arg6: memref<128x128xbf16, #tpu.memory_space<vmem>>, %arg7: memref<1x128xf32, #tpu.memory_space<vmem>>, %arg8: memref<128x128xbf16, #tpu.memory_space<vmem>>, %arg9: memref<1x128xf32, #tpu.memory_space<vmem>>, %arg10: memref<8x128xf32, #tpu.memory_space<vmem>>) attributes {dimension_semantics = [#tpu.dimension_semantics<parallel>], iteration_bounds = array<i64: 1>, scalar_prefetch = 0 : i64, scratch_operands = 0 : i64, tpu.core_type = #tpu.core_type<tc>, window_params = [{transform_indices = @transform_0, window_bounds = array<i64: 8, 128>}, {pipeline_mode = #tpu.pipeline_mode<synchronous>, transform_indices = @transform_1, window_bounds = array<i64: 128, 128>}, {pipeline_mode = #tpu.pipeline_mode<synchronous>, transform_indices = @transform_2, window_bounds = array<i64: 1, 128>}, {pipeline_mode = #tpu.pipeline_mode<synchronous>, transform_indices = @transform_3, window_bounds = array<i64: 128, 128>}, {pipeline_mode = #tpu.pipeline_mode<synchronous>, transform_indices = @transform_4, window_bounds = array<i64: 1, 128>}, {pipeline_mode = #tpu.pipeline_mode<synchronous>, transform_indices = @transform_5, window_bounds = array<i64: 128, 128>}, {pipeline_mode = #tpu.pipeline_mode<synchronous>, transform_indices = @transform_6, window_bounds = array<i64: 1, 128>}, {pipeline_mode = #tpu.pipeline_mode<synchronous>, transform_indices = @transform_7, window_bounds = array<i64: 128, 128>}, {pipeline_mode = #tpu.pipeline_mode<synchronous>, transform_indices = @transform_8, window_bounds = array<i64: 1, 128>}, {transform_indices = @transform_9, window_bounds = array<i64: 8, 128>}]} {
    %c0 = arith.constant 0 : index
    %c0_0 = arith.constant 0 : index
    %0 = vector.load %arg1[%c0, %c0_0] : memref<8x128xf32, #tpu.memory_space<vmem>>, vector<8x128xf32>
    %c0_1 = arith.constant 0 : index
    %c0_2 = arith.constant 0 : index
    %1 = vector.load %arg3[%c0_1, %c0_2] : memref<1x128xf32, #tpu.memory_space<vmem>>, vector<1x128xf32>
    %2 = arith.truncf %0 : vector<8x128xf32> to vector<8x128xbf16>
    %c0_3 = arith.constant 0 : index
    %c0_4 = arith.constant 0 : index
    %3 = vector.load %arg2[%c0_3, %c0_4] : memref<128x128xbf16, #tpu.memory_space<vmem>>, vector<128x128xbf16>
    %cst = arith.constant dense<0.000000e+00> : vector<8x128xf32>
    %4 = tpu.matmul %2, %3, %cst {dimension_numbers = #tpu.dot_dimension_numbers<[1], [0], [0], [1], [0, 0, 1, 1], [], []>} : vector<8x128xbf16>, vector<128x128xbf16>, vector<8x128xf32> -> vector<8x128xf32>
    %5 = vector.broadcast %1 : vector<1x128xf32> to vector<8x128xf32>
    %6 = arith.addf %5, %4 : vector<8x128xf32>
    %c0_5 = arith.constant 0 : index
    %c0_6 = arith.constant 0 : index
    %7 = vector.load %arg5[%c0_5, %c0_6] : memref<1x128xf32, #tpu.memory_space<vmem>>, vector<1x128xf32>
    %8 = arith.truncf %6 : vector<8x128xf32> to vector<8x128xbf16>
    %c0_7 = arith.constant 0 : index
    %c0_8 = arith.constant 0 : index
    %9 = vector.load %arg4[%c0_7, %c0_8] : memref<128x128xbf16, #tpu.memory_space<vmem>>, vector<128x128xbf16>
    %cst_9 = arith.constant dense<0.000000e+00> : vector<8x128xf32>
    %10 = tpu.matmul %8, %9, %cst_9 {dimension_numbers = #tpu.dot_dimension_numbers<[1], [0], [0], [1], [0, 0, 1, 1], [], []>} : vector<8x128xbf16>, vector<128x128xbf16>, vector<8x128xf32> -> vector<8x128xf32>
    %11 = vector.broadcast %7 : vector<1x128xf32> to vector<8x128xf32>
    %12 = arith.addf %11, %10 : vector<8x128xf32>
    %cst_10 = arith.constant 0.000000e+00 : f32
    %13 = vector.broadcast %cst_10 : f32 to vector<8x128xf32>
    %14 = arith.maximumf %12, %13 : vector<8x128xf32>
    %c0_11 = arith.constant 0 : index
    %c0_12 = arith.constant 0 : index
    %15 = vector.load %arg7[%c0_11, %c0_12] : memref<1x128xf32, #tpu.memory_space<vmem>>, vector<1x128xf32>
    %16 = arith.truncf %14 : vector<8x128xf32> to vector<8x128xbf16>
    %c0_13 = arith.constant 0 : index
    %c0_14 = arith.constant 0 : index
    %17 = vector.load %arg6[%c0_13, %c0_14] : memref<128x128xbf16, #tpu.memory_space<vmem>>, vector<128x128xbf16>
    %cst_15 = arith.constant dense<0.000000e+00> : vector<8x128xf32>
    %18 = tpu.matmul %16, %17, %cst_15 {dimension_numbers = #tpu.dot_dimension_numbers<[1], [0], [0], [1], [0, 0, 1, 1], [], []>} : vector<8x128xbf16>, vector<128x128xbf16>, vector<8x128xf32> -> vector<8x128xf32>
    %19 = vector.broadcast %15 : vector<1x128xf32> to vector<8x128xf32>
    %20 = arith.addf %19, %18 : vector<8x128xf32>
    %cst_16 = arith.constant 0.000000e+00 : f32
    %21 = vector.broadcast %cst_16 : f32 to vector<8x128xf32>
    %22 = arith.maximumf %20, %21 : vector<8x128xf32>
    %c0_17 = arith.constant 0 : index
    %c0_18 = arith.constant 0 : index
    %23 = vector.load %arg9[%c0_17, %c0_18] : memref<1x128xf32, #tpu.memory_space<vmem>>, vector<1x128xf32>
    %24 = arith.truncf %22 : vector<8x128xf32> to vector<8x128xbf16>
    %c0_19 = arith.constant 0 : index
    %c0_20 = arith.constant 0 : index
    %25 = vector.load %arg8[%c0_19, %c0_20] : memref<128x128xbf16, #tpu.memory_space<vmem>>, vector<128x128xbf16>
    %cst_21 = arith.constant dense<0.000000e+00> : vector<8x128xf32>
    %26 = tpu.matmul %24, %25, %cst_21 {dimension_numbers = #tpu.dot_dimension_numbers<[1], [0], [0], [1], [0, 0, 1, 1], [], []>} : vector<8x128xbf16>, vector<128x128xbf16>, vector<8x128xf32> -> vector<8x128xf32>
    %27 = vector.broadcast %23 : vector<1x128xf32> to vector<8x128xf32>
    %28 = arith.addf %27, %26 : vector<8x128xf32>
    %c0_22 = arith.constant 0 : index
    %c0_23 = arith.constant 0 : index
    %29 = vector.load %arg10[%c0_22, %c0_23] : memref<8x128xf32, #tpu.memory_space<vmem>>, vector<8x128xf32>
    tpu.vector_store %arg10[%c0_22, %c0_23], %28 {strides = array<i32>} : memref<8x128xf32, #tpu.memory_space<vmem>>, vector<8x128xf32>,
    return
  }
  func.func @transform_0(%arg0: i32) -> (i32, i32) {
    %c0_i32 = arith.constant 0 : i32
    %c0_i32_0 = arith.constant 0 : i32
    return %arg0, %c0_i32 : i32, i32
  }
  func.func @transform_1(%arg0: i32) -> (i32, i32) {
    %c0_i32 = arith.constant 0 : i32
    %c0_i32_0 = arith.constant 0 : i32
    %c0_i32_1 = arith.constant 0 : i32
    return %c0_i32, %c0_i32_0 : i32, i32
  }
  func.func @transform_2(%arg0: i32) -> (i32, i32) {
    %c0_i32 = arith.constant 0 : i32
    %c0_i32_0 = arith.constant 0 : i32
    %c0_i32_1 = arith.constant 0 : i32
    return %c0_i32, %c0_i32_0 : i32, i32
  }
  func.func @transform_3(%arg0: i32) -> (i32, i32) {
    %c0_i32 = arith.constant 0 : i32
    %c0_i32_0 = arith.constant 0 : i32
    %c0_i32_1 = arith.constant 0 : i32
    return %c0_i32, %c0_i32_0 : i32, i32
  }
  func.func @transform_4(%arg0: i32) -> (i32, i32) {
    %c0_i32 = arith.constant 0 : i32
    %c0_i32_0 = arith.constant 0 : i32
    %c0_i32_1 = arith.constant 0 : i32
    return %c0_i32, %c0_i32_0 : i32, i32
  }
  func.func @transform_5(%arg0: i32) -> (i32, i32) {
    %c0_i32 = arith.constant 0 : i32
    %c0_i32_0 = arith.constant 0 : i32
    %c0_i32_1 = arith.constant 0 : i32
    return %c0_i32, %c0_i32_0 : i32, i32
  }
  func.func @transform_6(%arg0: i32) -> (i32, i32) {
    %c0_i32 = arith.constant 0 : i32
    %c0_i32_0 = arith.constant 0 : i32
    %c0_i32_1 = arith.constant 0 : i32
    return %c0_i32, %c0_i32_0 : i32, i32
  }
  func.func @transform_7(%arg0: i32) -> (i32, i32) {
    %c0_i32 = arith.constant 0 : i32
    %c0_i32_0 = arith.constant 0 : i32
    %c0_i32_1 = arith.constant 0 : i32
    return %c0_i32, %c0_i32_0 : i32, i32
  }
  func.func @transform_8(%arg0: i32) -> (i32, i32) {
    %c0_i32 = arith.constant 0 : i32
    %c0_i32_0 = arith.constant 0 : i32
    %c0_i32_1 = arith.constant 0 : i32
    return %c0_i32, %c0_i32_0 : i32, i32
  }
  func.func @transform_9(%arg0: i32) -> (i32, i32) {
    %c0_i32 = arith.constant 0 : i32
    %c0_i32_0 = arith.constant 0 : i32
    return %arg0, %c0_i32 : i32, i32
  }
}

</mosaic_0001>

<bundles_post_ra>
// kernel: tpu_custom_call.1
= control target key start
LH: loop header
LB: loop body
LE: loop exit
PB: predicated region body
PF: predicated region fallthrough
CT: control target
= control target key end

     0   :  { %14 = vsyncpa [#allocation3], 0  ;;  %s1103_s0 = inlined_call_operand.hbm [shape: f32[8,128], index: 0, kind: input, shape index: {}]   ;;  %s1104_s1 = inlined_call_operand.hbm [shape: bf16[128,128], index: 1, kind: input, shape index: {}]   ;;  %s1105_s2 = inlined_call_operand.vmem [shape: f32[1,128], index: 2, kind: input, shape index: {}]   ;;  %s1106_s3 = inlined_call_operand.hbm [shape: bf16[128,128], index: 3, kind: input, shape index: {}]   ;;  %s1107_s4 = inlined_call_operand.vmem [shape: f32[1,128], index: 4, kind: input, shape index: {}]   ;;  %s1108_s5 = inlined_call_operand.hbm [shape: bf16[128,128], index: 5, kind: input, shape index: {}]   ;;  %s1109_s6 = inlined_call_operand.vmem [shape: f32[1,128], index: 6, kind: input, shape index: {}]   ;;  %s1110_s7 = inlined_call_operand.hbm [shape: bf16[128,128], index: 7, kind: input, shape index: {}]   ;;  %s1111_s8 = inlined_call_operand.vmem [shape: f32[1,128], index: 8, kind: input, shape index: {}]   ;;  %s1112_s9 = inlined_call_operand.hbm [shape: f32[8,128], index: 9, kind: output, shape index: {}]  }
   0x1   :  { %15 = vsyncpa [#allocation6], 0 }
   0x2   :  { %16 = vsyncpa [#allocation9], 0 }
   0x3   :  { %17 = vsyncpa [#allocation4], 0  ;;  %s907_s30 = smov [#allocation5]   ;;  %s767_s13 = scalar_lea.hbm %s1104_s1, 1024 }
   0x4   :  { %s33_s10 = sshll.u32 %s907_s30, 4  ;;  %p768_p0 = scmp.ne.s32.totalorder %s1104_s1, %s767_s13  ;;  %s34_s10 = int_to_ptr.vmem [resolvable:$true] %s33_s10 }
   0x5   :  { %p771_p1 = scmp.lt.u32.totalorder %s767_s13, %s1104_s1 }
   0x7   :  { %p773_p2 = pnand %p771_p1, %p768_p0 }
   0x9   :  { %776 = shalt.err (!%p773_p2)
}
   0xa   :  { %s777_s18 = scalar_lea.vmem %s34_s10, 1024  ;;  %p782_p4 = scmp.lt.s32.totalorder %s34_s10, %s34_s10 }
   0xb   :  { %p778_p3 = scmp.ne.s32.totalorder %s34_s10, %s777_s18  ;;  %p783_p5 = scmp.lt.s32.totalorder %s777_s18, %s777_s18 }
   0xd   :  { %p784_p6 = por %p783_p5, %p782_p4 }
   0xf   :  { %p785_p7 = pnand %p784_p6, %p778_p3 }
  0x11   :  { %788 = shalt.err (!%p785_p7)
}
  0x12   :  { %s908_s19 = smov 64   ;;  %s909_s20 = smov 4  }
  0x13   :  { %39 = dma.hbm_to_vmem [thread:$0]  %s1104_s1, 1024, %s34_s10, [#allocation6], %s908_s19, %s908_s19, %s909_s20  }
  0x14   :  { %s910_s23 = smov [#allocation8]   ;;  %s911_s25 = smov [#allocation2]  }
  0x15   :  { %s61_s24 = sshll.u32 %s910_s23, 4  ;;  %s24_s26 = sshll.u32 %s911_s25, 4  ;;  %s62_s24 = int_to_ptr.vmem [resolvable:$true] %s61_s24  ;;  %s25_s26 = int_to_ptr.vmem [resolvable:$true] %s24_s26 }
  0x16   :  { %s789_s29 = scalar_lea.hbm %s1108_s5, 1024 }
  0x17   :  { %p790_p8 = scmp.ne.s32.totalorder %s1108_s5, %s789_s29  ;;  %p793_p9 = scmp.lt.u32.totalorder %s789_s29, %s1108_s5 }
  0x19   :  { %p795_p10 = pnand %p793_p9, %p790_p8 }
  0x1b   :  { %798 = shalt.err (!%p795_p10)
}
  0x1c   :  { %s799_s1 = scalar_lea.vmem %s62_s24, 1024  ;;  %p804_p12 = scmp.lt.s32.totalorder %s62_s24, %s62_s24 }
  0x1d   :  { %p800_p11 = scmp.ne.s32.totalorder %s62_s24, %s799_s1  ;;  %p805_p13 = scmp.lt.s32.totalorder %s799_s1, %s799_s1 }
  0x1f   :  { %p806_p0 = por %p805_p13, %p804_p12 }
  0x21   :  { %p807_p1 = pnand %p806_p0, %p800_p11 }
  0x23   :  { %810 = shalt.err (!%p807_p1)
}
  0x24   :  { %67 = dma.hbm_to_vmem [thread:$0]  %s1108_s5, 1024, %s62_s24, [#allocation9], %s908_s19, %s908_s19, %s909_s20  }
  0x25   :  { %s811_s17 = scalar_lea.hbm %s1103_s0, 128 }
  0x26   :  { %p812_p2 = scmp.ne.s32.totalorder %s1103_s0, %s811_s17  ;;  %p815_p3 = scmp.lt.u32.totalorder %s811_s17, %s1103_s0 }
  0x28   :  { %p817_p4 = pnand %p815_p3, %p812_p2 }
  0x2a   :  { %820 = shalt.err (!%p817_p4)
}
  0x2b   :  { %s821_s25 = scalar_lea.vmem %s25_s26, 128  ;;  %p826_p6 = scmp.lt.s32.totalorder %s25_s26, %s25_s26 }
  0x2c   :  { %p822_p5 = scmp.ne.s32.totalorder %s25_s26, %s821_s25  ;;  %p827_p7 = scmp.lt.s32.totalorder %s821_s25, %s821_s25 }
  0x2e   :  { %p828_p8 = por %p827_p7, %p826_p6 }
  0x30   :  { %p829_p9 = pnand %p828_p8, %p822_p5 }
  0x32   :  { %832 = shalt.err (!%p829_p9)
}
  0x33   :  { %27 = dma.hbm_to_vmem [thread:$0]  %s1103_s0, 128, %s25_s26, [#allocation3]  }
  0x34   :  { %s912_s27 = smov [#allocation7]   ;;  %s913_s29 = smov [#allocation10]  }
  0x35   :  { %s47_s28 = sshll.u32 %s912_s27, 4  ;;  %s75_s30 = sshll.u32 %s913_s29, 4  ;;  %s48_s28 = int_to_ptr.vmem [resolvable:$true] %s47_s28  ;;  %s76_s30 = int_to_ptr.vmem [resolvable:$true] %s75_s30 }
  0x36   :  { %s833_s13 = scalar_lea.hbm %s1106_s3, 1024 }
  0x37   :  { %p834_p10 = scmp.ne.s32.totalorder %s1106_s3, %s833_s13  ;;  %p837_p11 = scmp.lt.u32.totalorder %s833_s13, %s1106_s3 }
  0x39   :  { %p839_p12 = pnand %p837_p11, %p834_p10 }
  0x3b   :  { %842 = shalt.err (!%p839_p12)
}
  0x3c   :  { %s843_s0 = scalar_lea.vmem %s48_s28, 1024  ;;  %p848_p0 = scmp.lt.s32.totalorder %s48_s28, %s48_s28 }
  0x3d   :  { %p844_p13 = scmp.ne.s32.totalorder %s48_s28, %s843_s0  ;;  %p849_p1 = scmp.lt.s32.totalorder %s843_s0, %s843_s0 }
  0x3f   :  { %p850_p2 = por %p849_p1, %p848_p0 }
  0x41   :  { %p851_p3 = pnand %p850_p2, %p844_p13 }
  0x43   :  { %854 = shalt.err (!%p851_p3)
}
  0x44   :  { %53 = dma.hbm_to_vmem [thread:$0]  %s1106_s3, 1024, %s48_s28, [#allocation6], %s908_s19, %s908_s19, %s909_s20  }
  0x45   :  { %s855_s21 = scalar_lea.hbm %s1110_s7, 1024 }
  0x46   :  { %p856_p4 = scmp.ne.s32.totalorder %s1110_s7, %s855_s21  ;;  %p859_p5 = scmp.lt.u32.totalorder %s855_s21, %s1110_s7 }
  0x48   :  { %p861_p6 = pnand %p859_p5, %p856_p4 }
  0x4a   :  { %864 = shalt.err (!%p861_p6)
}
  0x4b   :  { %s865_s24 = scalar_lea.vmem %s76_s30, 1024  ;;  %p870_p8 = scmp.lt.s32.totalorder %s76_s30, %s76_s30 }
  0x4c   :  { %p866_p7 = scmp.ne.s32.totalorder %s76_s30, %s865_s24  ;;  %p871_p9 = scmp.lt.s32.totalorder %s865_s24, %s865_s24 }
  0x4e   :  { %p872_p10 = por %p871_p9, %p870_p8 }
  0x50   :  { %p873_p11 = pnand %p872_p10, %p866_p7 }
  0x52   :  { %876 = shalt.err (!%p873_p11)
}
  0x53   :  { %81 = dma.hbm_to_vmem [thread:$0]  %s1110_s7, 1024, %s76_s30, [#allocation9], %s908_s19, %s908_s19, %s909_s20  }
  0x54   :  { %899 = dma.done.wait [#allocation3], 128  }
  0x55   :  { %900 = vsyncadd [#allocation3], 4294967168 }
  0x56   :  { %901 = dma.done.wait [#allocation6], 2048  }
  0x57   :  { %902 = vsyncadd [#allocation6], 4294965248 }
  0x58   :  { %903 = dma.done.wait [#allocation9], 2048  }
  0x59   :  { %904 = vsyncadd [#allocation9], 4294965248  ;;  %v914_v0 = vmov 0.0   ;;  %vm915_vm0 = vmmov 0   ;;  %v735_v1 = vld [vmem:[#allocation5] sm:$0xff]   ;;  %v736_v2 = vld [vmem:[#allocation5 + $0x8] sm:$0xff]  }
  0x5a   :  { %645 = vmatprep.subr.bf16.mxu0 %v914_v0  ;;  %661 = vmatprep.mubr.msk.bf16.mxu0 %vm915_vm0, %v914_v0  ;;  %v737_v3 = vld [vmem:[#allocation5 + $0x10] sm:$0xff]   ;;  %v743_v4 = vld [vmem:[#allocation7] sm:$0xff]   ;;  %v738_v5 = vld [vmem:[#allocation5 + $0x18] sm:$0xff]   ;;  %s916_s11 = smov [#allocation11]  }
  0x5b   :  { %665 = vmatprep.subr.bf16.mxu1 %v914_v0  ;;  %681 = vmatprep.mubr.msk.bf16.mxu1 %vm915_vm0, %v914_v0  ;;  %v744_v6 = vld [vmem:[#allocation7 + $0x8] sm:$0xff]   ;;  %v739_v7 = vld [vmem:[#allocation5 + $0x20] sm:$0xff]   ;;  %v745_v8 = vld [vmem:[#allocation7 + $0x10] sm:$0xff]   ;;  %s562_s12 = sshll.u32 %s916_s11, 4  ;;  %s563_s12 = int_to_ptr.vmem [resolvable:$true] %s562_s12 }
  0x5c   :  { %646 = vmatpush3.bf16.msra.mxu0 %v735_v1  ;;  %666 = vmatpush3.bf16.msra.mxu1 %v743_v4  ;;  %v740_v9 = vld [vmem:[#allocation5 + $0x28] sm:$0xff]   ;;  %v746_v10 = vld [vmem:[#allocation7 + $0x18] sm:$0xff]   ;;  %v741_v11 = vld [vmem:[#allocation5 + $0x30] sm:$0xff]   ;;  %p882_p13 = scmp.lt.s32.totalorder %s563_s12, %s563_s12 }
  0x5d   :  { %647 = vmatprep.subr.bf16.mxu0 %v914_v0  ;;  %667 = vmatprep.subr.bf16.mxu1 %v914_v0  ;;  %v747_v12 = vld [vmem:[#allocation7 + $0x20] sm:$0xff]   ;;  %v742_v13 = vld [vmem:[#allocation5 + $0x38] sm:$0xff]   ;;  %v748_v15 = vld [vmem:[#allocation7 + $0x28] sm:$0xff]  }
  0x5e   :  { %v100_v14 = vld [vmem:[#allocation2] sm:$0xff]  ;;  %v749_v17 = vld [vmem:[#allocation7 + $0x30] sm:$0xff]   ;;  %v751_v19 = vld [vmem:[#allocation8] sm:$0xff]  }
  0x5f   :  { %v102_v16 = vpack.c.bf16 %v100_v14, %v100_v14  ;;  %v750_v18 = vld [vmem:[#allocation7 + $0x38] sm:$0xff]   ;;  %v752_v20 = vld [vmem:[#allocation8 + $0x8] sm:$0xff]   ;;  %v753_v21 = vld [vmem:[#allocation8 + $0x10] sm:$0xff]  }
  0x60   :  { %648 = vmatpush3.bf16.msra.mxu0 %v736_v2  ;;  %668 = vmatpush3.bf16.msra.mxu1 %v744_v6  ;;  %v754_v22 = vld [vmem:[#allocation8 + $0x18] sm:$0xff]   ;;  %v755_v23 = vld [vmem:[#allocation8 + $0x20] sm:$0xff]   ;;  %v756_v24 = vld [vmem:[#allocation8 + $0x28] sm:$0xff]  }
  0x61   :  { %649 = vmatprep.subr.bf16.mxu0 %v914_v0  ;;  %669 = vmatprep.subr.bf16.mxu1 %v914_v0  ;;  %v581_v25 = vld [vmem:[%s1105_s2] ss:$0 sm:$0xff]  ;;  %v757_v32 = vld [vmem:[#allocation8 + $0x30] sm:$0xff]   ;;  %v759_v34 = vld [vmem:[#allocation10] sm:$0xff]  }
  0x62   :  { %v758_v33 = vld [vmem:[#allocation8 + $0x38] sm:$0xff]   ;;  %v760_v35 = vld [vmem:[#allocation10 + $0x8] sm:$0xff]   ;;  %v761_v36 = vld [vmem:[#allocation10 + $0x10] sm:$0xff]  }
  0x63   :  { %v762_v37 = vld [vmem:[#allocation10 + $0x18] sm:$0xff]   ;;  %v763_v38 = vld [vmem:[#allocation10 + $0x20] sm:$0xff]   ;;  %v764_v39 = vld [vmem:[#allocation10 + $0x28] sm:$0xff]  }
  0x64   :  { %650 = vmatpush3.bf16.msra.mxu0 %v737_v3  ;;  %670 = vmatpush3.bf16.msra.mxu1 %v745_v8  ;;  %v590_v40 = vld [vmem:[%s1107_s4] ss:$0 sm:$0xff]  ;;  %v765_v48 = vld [vmem:[#allocation10 + $0x30] sm:$0xff]  }
  0x65   :  { %651 = vmatprep.subr.bf16.mxu0 %v914_v0  ;;  %671 = vmatprep.subr.bf16.mxu1 %v914_v0  ;;  %v766_v49 = vld [vmem:[#allocation10 + $0x38] sm:$0xff]  }
  0x66   :  { %v599_v50 = vld [vmem:[%s1109_s6] ss:$0 sm:$0xff]  ;;  %s877_s6 = scalar_lea.vmem %s563_s12, 128 }
  0x67   :  { %v608_v58 = vld [vmem:[%s1111_s8] ss:$0 sm:$0xff]  ;;  %p878_p12 = scmp.ne.s32.totalorder %s563_s12, %s877_s6  ;;  %p883_p0 = scmp.lt.s32.totalorder %s877_s6, %s877_s6 }
  0x68   :  { %652 = vmatpush3.bf16.msra.mxu0 %v738_v5  ;;  %672 = vmatpush3.bf16.msra.mxu1 %v746_v10 }
  0x69   :  { %653 = vmatprep.subr.bf16.mxu0 %v914_v0  ;;  %673 = vmatprep.subr.bf16.mxu1 %v914_v0  ;;  %p884_p1 = por %p883_p0, %p882_p13 }
  0x6b   :  { %p885_p2 = pnand %p884_p1, %p878_p12 }
  0x6c   :  { %654 = vmatpush3.bf16.msra.mxu0 %v739_v7  ;;  %674 = vmatpush3.bf16.msra.mxu1 %v747_v12 }
  0x6d   :  { %655 = vmatprep.subr.bf16.mxu0 %v914_v0  ;;  %675 = vmatprep.subr.bf16.mxu1 %v914_v0 }
  0x70   :  { %656 = vmatpush3.bf16.msra.mxu0 %v740_v9  ;;  %676 = vmatpush3.bf16.msra.mxu1 %v748_v15 }
  0x71   :  { %657 = vmatprep.subr.bf16.mxu0 %v914_v0  ;;  %677 = vmatprep.subr.bf16.mxu1 %v914_v0 }
  0x74   :  { %658 = vmatpush3.bf16.msra.mxu0 %v741_v11  ;;  %678 = vmatpush3.bf16.msra.mxu1 %v749_v17 }
  0x75   :  { %659 = vmatprep.subr.bf16.mxu0 %v914_v0  ;;  %679 = vmatprep.subr.bf16.mxu1 %v914_v0 }
  0x78   :  { %660 = vmatpush3.bf16.msra.mxu0 %v742_v13  ;;  %680 = vmatpush3.bf16.msra.mxu1 %v750_v18 }
  0x79   :  { %685 = vmatprep.subr.bf16.mxu0 %v914_v0  ;;  %705 = vmatprep.subr.bf16.mxu1 %v914_v0 }
  0x7b   :  { %662 = vmatmul.mubr.bf16.vlgmr.msra.gmra.mrb[0].mxu0 %v102_v16 }
  0x7c   :  { %701 = vmatprep.mubr.msk.bf16.mxu0 %vm915_vm0, %v914_v0  ;;  %686 = vmatpush3.bf16.msra.mxu0 %v751_v19 }
  0x7d   :  { %687 = vmatprep.subr.bf16.mxu0 %v914_v0 }
  0x80   :  { %688 = vmatpush3.bf16.msra.mxu0 %v752_v20 }
  0x81   :  { %689 = vmatprep.subr.bf16.mxu0 %v914_v0 }
  0x84   :  { %690 = vmatpush3.bf16.msra.mxu0 %v753_v21 }
  0x85   :  { %691 = vmatprep.subr.bf16.mxu0 %v914_v0 }
  0x88   :  { %692 = vmatpush3.bf16.msra.mxu0 %v754_v22 }
  0x89   :  { %693 = vmatprep.subr.bf16.mxu0 %v914_v0 }
  0x8c   :  { %694 = vmatpush3.bf16.msra.mxu0 %v755_v23 }
  0x8d   :  { %695 = vmatprep.subr.bf16.mxu0 %v914_v0 }
  0x90   :  { %696 = vmatpush3.bf16.msra.mxu0 %v756_v24 }
  0x91   :  { %697 = vmatprep.subr.bf16.mxu0 %v914_v0 }
  0x94   :  { %698 = vmatpush3.bf16.msra.mxu0 %v757_v32 }
  0x95   :  { %699 = vmatprep.subr.bf16.mxu0 %v914_v0 }
  0x98   :  { %700 = vmatpush3.bf16.msra.mxu0 %v758_v33 }
 0x14e   :  { %v201_v26 = vpop.f32.mrb[0].mxu0 }
 0x14f   :  { %v213_v27 = vadd.f32 %v581_v25, %v201_v26  ;;  %v663_v28 = vpop.f32.mrb[1].mxu0 }
 0x150   :  { %v204_v29 = vpop.f32.mrb[2].mxu0 }
 0x151   :  { %v215_v30 = vpack.c.bf16 %v213_v27, %v213_v27  ;;  %v664_v31 = vpop.f32.mrb[3].mxu0 }
 0x153   :  { %682 = vmatmul.mubr.bf16.vlgmr.msra.gmra.mrb[0].mxu1 %v215_v30 }
 0x154   :  { %721 = vmatprep.mubr.msk.bf16.mxu1 %vm915_vm0, %v914_v0  ;;  %706 = vmatpush3.bf16.msra.mxu1 %v759_v34 }
 0x155   :  { %707 = vmatprep.subr.bf16.mxu1 %v914_v0 }
 0x158   :  { %708 = vmatpush3.bf16.msra.mxu1 %v760_v35 }
 0x159   :  { %709 = vmatprep.subr.bf16.mxu1 %v914_v0 }
 0x15c   :  { %710 = vmatpush3.bf16.msra.mxu1 %v761_v36 }
 0x15d   :  { %711 = vmatprep.subr.bf16.mxu1 %v914_v0 }
 0x160   :  { %712 = vmatpush3.bf16.msra.mxu1 %v762_v37 }
 0x161   :  { %713 = vmatprep.subr.bf16.mxu1 %v914_v0 }
 0x164   :  { %714 = vmatpush3.bf16.msra.mxu1 %v763_v38 }
 0x165   :  { %715 = vmatprep.subr.bf16.mxu1 %v914_v0 }
 0x168   :  { %716 = vmatpush3.bf16.msra.mxu1 %v764_v39 }
 0x169   :  { %717 = vmatprep.subr.bf16.mxu1 %v914_v0 }
 0x16c   :  { %718 = vmatpush3.bf16.msra.mxu1 %v765_v48 }
 0x16d   :  { %719 = vmatprep.subr.bf16.mxu1 %v914_v0 }
 0x170   :  { %720 = vmatpush3.bf16.msra.mxu1 %v766_v49 }
 0x226   :  { %v314_v41 = vpop.f32.mrb[0].mxu1 }
 0x227   :  { %v326_v42 = vadd.f32 %v590_v40, %v314_v41  ;;  %v683_v43 = vpop.f32.mrb[1].mxu1 }
 0x228   :  { %v317_v44 = vpop.f32.mrb[2].mxu1 }
 0x229   :  { %v327_v45 = vmax.f32 %v326_v42, 0.0  ;;  %v684_v46 = vpop.f32.mrb[3].mxu1 }
 0x22b   :  { %v329_v47 = vpack.c.bf16 %v327_v45, %v327_v45 }
 0x22d   :  { %702 = vmatmul.mubr.bf16.vlgmr.msra.gmra.mrb[4].mxu0 %v329_v47 }
 0x300   :  { %v428_v51 = vpop.f32.mrb[4].mxu0 }
 0x301   :  { %v440_v52 = vadd.f32 %v599_v50, %v428_v51  ;;  %v703_v53 = vpop.f32.mrb[5].mxu0 }
 0x302   :  { %v431_v54 = vpop.f32.mrb[6].mxu0 }
 0x303   :  { %v441_v55 = vmax.f32 %v440_v52, 0.0  ;;  %v704_v56 = vpop.f32.mrb[7].mxu0 }
 0x305   :  { %v443_v57 = vpack.c.bf16 %v441_v55, %v441_v55 }
 0x307   :  { %722 = vmatmul.mubr.bf16.vlgmr.msra.gmra.mrb[4].mxu1 %v443_v57 }
 0x3da   :  { %v542_v59 = vpop.f32.mrb[4].mxu1 }
 0x3db   :  { %v554_v60 = vadd.f32 %v608_v58, %v542_v59  ;;  %v723_v61 = vpop.f32.mrb[5].mxu1 }
 0x3dc   :  { %v545_v62 = vpop.f32.mrb[6].mxu1 }
 0x3dd   :  { %555 = vst [vmem:[#allocation11] sm:$0xff] %v554_v60  ;;  %v724_v63 = vpop.f32.mrb[7].mxu1 }
 0x3de   :  { %888 = shalt.err (!%p885_p2)
}
 0x3df   :  { %s889_s8 = scalar_lea.hbm %s1112_s9, 128 }
 0x3e0   :  { %p890_p3 = scmp.ne.s32.totalorder %s1112_s9, %s889_s8  ;;  %p893_p4 = scmp.lt.u32.totalorder %s889_s8, %s1112_s9 }
 0x3e2   :  { %p895_p5 = pnand %p893_p4, %p890_p3 }
 0x3e4   :  { %898 = shalt.err (!%p895_p5)
}
 0x3e5   :  { %565 = dma.vmem_to_hbm [thread:$0]  %s563_s12, 128, %s1112_s9, [#allocation4]  }
 0x3e6   :  { %905 = dma.done.wait [#allocation4], 128  }
 0x3e7   :  { %906 = vsyncadd [#allocation4], 4294967168 }
 0x3e8   :  { %569 = vsyncpa [#allocation3], 1 }
 0x3e9   :  { %570 = vsyncpa [#allocation6], 1 }
 0x3ea   :  { %571 = vsyncpa [#allocation9], 1 }
 0x3eb   :  { %572 = vsyncpa [#allocation4], 1 }

// kernel: tpu_custom_call.1
= control target key start
LH: loop header
LB: loop body
LE: loop exit
PB: predicated region body
PF: predicated region fallthrough
CT: control target
= control target key end

     0   :  { %14 = vsyncpa [#allocation3], 0  ;;  %s1103_s0 = inlined_call_operand.hbm [shape: f32[8,128], index: 0, kind: input, shape index: {}]   ;;  %s1104_s1 = inlined_call_operand.hbm [shape: bf16[128,128], index: 1, kind: input, shape index: {}]   ;;  %s1105_s2 = inlined_call_operand.vmem [shape: f32[1,128], index: 2, kind: input, shape index: {}]   ;;  %s1106_s3 = inlined_call_operand.hbm [shape: bf16[128,128], index: 3, kind: input, shape index: {}]   ;;  %s1107_s4 = inlined_call_operand.vmem [shape: f32[1,128], index: 4, kind: input, shape index: {}]   ;;  %s1108_s5 = inlined_call_operand.hbm [shape: bf16[128,128], index: 5, kind: input, shape index: {}]   ;;  %s1109_s6 = inlined_call_operand.vmem [shape: f32[1,128], index: 6, kind: input, shape index: {}]   ;;  %s1110_s7 = inlined_call_operand.hbm [shape: bf16[128,128], index: 7, kind: input, shape index: {}]   ;;  %s1111_s8 = inlined_call_operand.vmem [shape: f32[1,128], index: 8, kind: input, shape index: {}]   ;;  %s1112_s9 = inlined_call_operand.hbm [shape: f32[8,128], index: 9, kind: output, shape index: {}]  }
   0x1   :  { %15 = vsyncpa [#allocation6], 0 }
   0x2   :  { %16 = vsyncpa [#allocation9], 0 }
   0x3   :  { %17 = vsyncpa [#allocation4], 0  ;;  %s907_s30 = smov [#allocation5]   ;;  %s767_s13 = scalar_lea.hbm %s1104_s1, 1024 }
   0x4   :  { %s33_s10 = sshll.u32 %s907_s30, 4  ;;  %p768_p0 = scmp.ne.s32.totalorder %s1104_s1, %s767_s13  ;;  %s34_s10 = int_to_ptr.vmem [resolvable:$true] %s33_s10 }
   0x5   :  { %p771_p1 = scmp.lt.u32.totalorder %s767_s13, %s1104_s1 }
   0x7   :  { %p773_p2 = pnand %p771_p1, %p768_p0 }
   0x9   :  { %776 = shalt.err (!%p773_p2)
}
   0xa   :  { %s777_s18 = scalar_lea.vmem %s34_s10, 1024  ;;  %p782_p4 = scmp.lt.s32.totalorder %s34_s10, %s34_s10 }
   0xb   :  { %p778_p3 = scmp.ne.s32.totalorder %s34_s10, %s777_s18  ;;  %p783_p5 = scmp.lt.s32.totalorder %s777_s18, %s777_s18 }
   0xd   :  { %p784_p6 = por %p783_p5, %p782_p4 }
   0xf   :  { %p785_p7 = pnand %p784_p6, %p778_p3 }
  0x11   :  { %788 = shalt.err (!%p785_p7)
}
  0x12   :  { %s908_s19 = smov 64   ;;  %s909_s20 = smov 4  }
  0x13   :  { %39 = dma.hbm_to_vmem [thread:$0]  %s1104_s1, 1024, %s34_s10, [#allocation6], %s908_s19, %s908_s19, %s909_s20  }
  0x14   :  { %s910_s23 = smov [#allocation8]   ;;  %s911_s25 = smov [#allocation2]  }
  0x15   :  { %s61_s24 = sshll.u32 %s910_s23, 4  ;;  %s24_s26 = sshll.u32 %s911_s25, 4  ;;  %s62_s24 = int_to_ptr.vmem [resolvable:$true] %s61_s24  ;;  %s25_s26 = int_to_ptr.vmem [resolvable:$true] %s24_s26 }
  0x16   :  { %s789_s29 = scalar_lea.hbm %s1108_s5, 1024 }
  0x17   :  { %p790_p8 = scmp.ne.s32.totalorder %s1108_s5, %s789_s29  ;;  %p793_p9 = scmp.lt.u32.totalorder %s789_s29, %s1108_s5 }
  0x19   :  { %p795_p10 = pnand %p793_p9, %p790_p8 }
  0x1b   :  { %798 = shalt.err (!%p795_p10)
}
  0x1c   :  { %s799_s1 = scalar_lea.vmem %s62_s24, 1024  ;;  %p804_p12 = scmp.lt.s32.totalorder %s62_s24, %s62_s24 }
  0x1d   :  { %p800_p11 = scmp.ne.s32.totalorder %s62_s24, %s799_s1  ;;  %p805_p13 = scmp.lt.s32.totalorder %s799_s1, %s799_s1 }
  0x1f   :  { %p806_p0 = por %p805_p13, %p804_p12 }
  0x21   :  { %p807_p1 = pnand %p806_p0, %p800_p11 }
  0x23   :  { %810 = shalt.err (!%p807_p1)
}
  0x24   :  { %67 = dma.hbm_to_vmem [thread:$0]  %s1108_s5, 1024, %s62_s24, [#allocation9], %s908_s19, %s908_s19, %s909_s20  }
  0x25   :  { %s811_s17 = scalar_lea.hbm %s1103_s0, 128 }
  0x26   :  { %p812_p2 = scmp.ne.s32.totalorder %s1103_s0, %s811_s17  ;;  %p815_p3 = scmp.lt.u32.totalorder %s811_s17, %s1103_s0 }
  0x28   :  { %p817_p4 = pnand %p815_p3, %p812_p2 }
  0x2a   :  { %820 = shalt.err (!%p817_p4)
}
  0x2b   :  { %s821_s25 = scalar_lea.vmem %s25_s26, 128  ;;  %p826_p6 = scmp.lt.s32.totalorder %s25_s26, %s25_s26 }
  0x2c   :  { %p822_p5 = scmp.ne.s32.totalorder %s25_s26, %s821_s25  ;;  %p827_p7 = scmp.lt.s32.totalorder %s821_s25, %s821_s25 }
  0x2e   :  { %p828_p8 = por %p827_p7, %p826_p6 }
  0x30   :  { %p829_p9 = pnand %p828_p8, %p822_p5 }
  0x32   :  { %832 = shalt.err (!%p829_p9)
}
  0x33   :  { %27 = dma.hbm_to_vmem [thread:$0]  %s1103_s0, 128, %s25_s26, [#allocation3]  }
  0x34   :  { %s912_s27 = smov [#allocation7]   ;;  %s913_s29 = smov [#allocation10]  }
  0x35   :  { %s47_s28 = sshll.u32 %s912_s27, 4  ;;  %s75_s30 = sshll.u32 %s913_s29, 4  ;;  %s48_s28 = int_to_ptr.vmem [resolvable:$true] %s47_s28  ;;  %s76_s30 = int_to_ptr.vmem [resolvable:$true] %s75_s30 }
  0x36   :  { %s833_s13 = scalar_lea.hbm %s1106_s3, 1024 }
  0x37   :  { %p834_p10 = scmp.ne.s32.totalorder %s1106_s3, %s833_s13  ;;  %p837_p11 = scmp.lt.u32.totalorder %s833_s13, %s1106_s3 }
  0x39   :  { %p839_p12 = pnand %p837_p11, %p834_p10 }
  0x3b   :  { %842 = shalt.err (!%p839_p12)
}
  0x3c   :  { %s843_s0 = scalar_lea.vmem %s48_s28, 1024  ;;  %p848_p0 = scmp.lt.s32.totalorder %s48_s28, %s48_s28 }
  0x3d   :  { %p844_p13 = scmp.ne.s32.totalorder %s48_s28, %s843_s0  ;;  %p849_p1 = scmp.lt.s32.totalorder %s843_s0, %s843_s0 }
  0x3f   :  { %p850_p2 = por %p849_p1, %p848_p0 }
  0x41   :  { %p851_p3 = pnand %p850_p2, %p844_p13 }
  0x43   :  { %854 = shalt.err (!%p851_p3)
}
  0x44   :  { %53 = dma.hbm_to_vmem [thread:$0]  %s1106_s3, 1024, %s48_s28, [#allocation6], %s908_s19, %s908_s19, %s909_s20  }
  0x45   :  { %s855_s21 = scalar_lea.hbm %s1110_s7, 1024 }
  0x46   :  { %p856_p4 = scmp.ne.s32.totalorder %s1110_s7, %s855_s21  ;;  %p859_p5 = scmp.lt.u32.totalorder %s855_s21, %s1110_s7 }
  0x48   :  { %p861_p6 = pnand %p859_p5, %p856_p4 }
  0x4a   :  { %864 = shalt.err (!%p861_p6)
}
  0x4b   :  { %s865_s24 = scalar_lea.vmem %s76_s30, 1024  ;;  %p870_p8 = scmp.lt.s32.totalorder %s76_s30, %s76_s30 }
  0x4c   :  { %p866_p7 = scmp.ne.s32.totalorder %s76_s30, %s865_s24  ;;  %p871_p9 = scmp.lt.s32.totalorder %s865_s24, %s865_s24 }
  0x4e   :  { %p872_p10 = por %p871_p9, %p870_p8 }
  0x50   :  { %p873_p11 = pnand %p872_p10, %p866_p7 }
  0x52   :  { %876 = shalt.err (!%p873_p11)
}
  0x53   :  { %81 = dma.hbm_to_vmem [thread:$0]  %s1110_s7, 1024, %s76_s30, [#allocation9], %s908_s19, %s908_s19, %s909_s20  }
  0x54   :  { %899 = dma.done.wait [#allocation3], 128  }
  0x55   :  { %900 = vsyncadd [#allocation3], 4294967168 }
  0x56   :  { %901 = dma.done.wait [#allocation6], 2048  }
  0x57   :  { %902 = vsyncadd [#allocation6], 4294965248 }
  0x58   :  { %903 = dma.done.wait [#allocation9], 2048  }
  0x59   :  { %904 = vsyncadd [#allocation9], 4294965248  ;;  %v914_v0 = vmov 0.0   ;;  %vm915_vm0 = vmmov 0   ;;  %v735_v1 = vld [vmem:[#allocation5] sm:$0xff]   ;;  %v736_v2 = vld [vmem:[#allocation5 + $0x8] sm:$0xff]  }
  0x5a   :  { %645 = vmatprep.subr.bf16.mxu0 %v914_v0  ;;  %661 = vmatprep.mubr.msk.bf16.mxu0 %vm915_vm0, %v914_v0  ;;  %v737_v3 = vld [vmem:[#allocation5 + $0x10] sm:$0xff]   ;;  %v743_v4 = vld [vmem:[#allocation7] sm:$0xff]   ;;  %v738_v5 = vld [vmem:[#allocation5 + $0x18] sm:$0xff]   ;;  %s916_s11 = smov [#allocation11]  }
  0x5b   :  { %665 = vmatprep.subr.bf16.mxu1 %v914_v0  ;;  %681 = vmatprep.mubr.msk.bf16.mxu1 %vm915_vm0, %v914_v0  ;;  %v744_v6 = vld [vmem:[#allocation7 + $0x8] sm:$0xff]   ;;  %v739_v7 = vld [vmem:[#allocation5 + $0x20] sm:$0xff]   ;;  %v745_v8 = vld [vmem:[#allocation7 + $0x10] sm:$0xff]   ;;  %s562_s12 = sshll.u32 %s916_s11, 4  ;;  %s563_s12 = int_to_ptr.vmem [resolvable:$true] %s562_s12 }
  0x5c   :  { %646 = vmatpush3.bf16.msra.mxu0 %v735_v1  ;;  %666 = vmatpush3.bf16.msra.mxu1 %v743_v4  ;;  %v740_v9 = vld [vmem:[#allocation5 + $0x28] sm:$0xff]   ;;  %v746_v10 = vld [vmem:[#allocation7 + $0x18] sm:$0xff]   ;;  %v741_v11 = vld [vmem:[#allocation5 + $0x30] sm:$0xff]   ;;  %p882_p13 = scmp.lt.s32.totalorder %s563_s12, %s563_s12 }
  0x5d   :  { %647 = vmatprep.subr.bf16.mxu0 %v914_v0  ;;  %667 = vmatprep.subr.bf16.mxu1 %v914_v0  ;;  %v747_v12 = vld [vmem:[#allocation7 + $0x20] sm:$0xff]   ;;  %v742_v13 = vld [vmem:[#allocation5 + $0x38] sm:$0xff]   ;;  %v748_v15 = vld [vmem:[#allocation7 + $0x28] sm:$0xff]  }
  0x5e   :  { %v100_v14 = vld [vmem:[#allocation2] sm:$0xff]  ;;  %v749_v17 = vld [vmem:[#allocation7 + $0x30] sm:$0xff]   ;;  %v751_v19 = vld [vmem:[#allocation8] sm:$0xff]  }
  0x5f   :  { %v102_v16 = vpack.c.bf16 %v100_v14, %v100_v14  ;;  %v750_v18 = vld [vmem:[#allocation7 + $0x38] sm:$0xff]   ;;  %v752_v20 = vld [vmem:[#allocation8 + $0x8] sm:$0xff]   ;;  %v753_v21 = vld [vmem:[#allocation8 + $0x10] sm:$0xff]  }
  0x60   :  { %648 = vmatpush3.bf16.msra.mxu0 %v736_v2  ;;  %668 = vmatpush3.bf16.msra.mxu1 %v744_v6  ;;  %v754_v22 = vld [vmem:[#allocation8 + $0x18] sm:$0xff]   ;;  %v755_v23 = vld [vmem:[#allocation8 + $0x20] sm:$0xff]   ;;  %v756_v24 = vld [vmem:[#allocation8 + $0x28] sm:$0xff]  }
  0x61   :  { %649 = vmatprep.subr.bf16.mxu0 %v914_v0  ;;  %669 = vmatprep.subr.bf16.mxu1 %v914_v0  ;;  %v581_v25 = vld [vmem:[%s1105_s2] ss:$0 sm:$0xff]  ;;  %v757_v32 = vld [vmem:[#allocation8 + $0x30] sm:$0xff]   ;;  %v759_v34 = vld [vmem:[#allocation10] sm:$0xff]  }
  0x62   :  { %v758_v33 = vld [vmem:[#allocation8 + $0x38] sm:$0xff]   ;;  %v760_v35 = vld [vmem:[#allocation10 + $0x8] sm:$0xff]   ;;  %v761_v36 = vld [vmem:[#allocation10 + $0x10] sm:$0xff]  }
  0x63   :  { %v762_v37 = vld [vmem:[#allocation10 + $0x18] sm:$0xff]   ;;  %v763_v38 = vld [vmem:[#allocation10 + $0x20] sm:$0xff]   ;;  %v764_v39 = vld [vmem:[#allocation10 + $0x28] sm:$0xff]  }
  0x64   :  { %650 = vmatpush3.bf16.msra.mxu0 %v737_v3  ;;  %670 = vmatpush3.bf16.msra.mxu1 %v745_v8  ;;  %v590_v40 = vld [vmem:[%s1107_s4] ss:$0 sm:$0xff]  ;;  %v765_v48 = vld [vmem:[#allocation10 + $0x30] sm:$0xff]  }
  0x65   :  { %651 = vmatprep.subr.bf16.mxu0 %v914_v0  ;;  %671 = vmatprep.subr.bf16.mxu1 %v914_v0  ;;  %v766_v49 = vld [vmem:[#allocation10 + $0x38] sm:$0xff]  }
  0x66   :  { %v599_v50 = vld [vmem:[%s1109_s6] ss:$0 sm:$0xff]  ;;  %s877_s6 = scalar_lea.vmem %s563_s12, 128 }
  0x67   :  { %v608_v58 = vld [vmem:[%s1111_s8] ss:$0 sm:$0xff]  ;;  %p878_p12 = scmp.ne.s32.totalorder %s563_s12, %s877_s6  ;;  %p883_p0 = scmp.lt.s32.totalorder %s877_s6, %s877_s6 }
  0x68   :  { %652 = vmatpush3.bf16.msra.mxu0 %v738_v5  ;;  %672 = vmatpush3.bf16.msra.mxu1 %v746_v10 }
  0x69   :  { %653 = vmatprep.subr.bf16.mxu0 %v914_v0  ;;  %673 = vmatprep.subr.bf16.mxu1 %v914_v0  ;;  %p884_p1 = por %p883_p0, %p882_p13 }
  0x6b   :  { %p885_p2 = pnand %p884_p1, %p878_p12 }
  0x6c   :  { %654 = vmatpush3.bf16.msra.mxu0 %v739_v7  ;;  %674 = vmatpush3.bf16.msra.mxu1 %v747_v12 }
  0x6d   :  { %655 = vmatprep.subr.bf16.mxu0 %v914_v0  ;;  %675 = vmatprep.subr.bf16.mxu1 %v914_v0 }
  0x70   :  { %656 = vmatpush3.bf16.msra.mxu0 %v740_v9  ;;  %676 = vmatpush3.bf16.msra.mxu1 %v748_v15 }
  0x71   :  { %657 = vmatprep.subr.bf16.mxu0 %v914_v0  ;;  %677 = vmatprep.subr.bf16.mxu1 %v914_v0 }
  0x74   :  { %658 = vmatpush3.bf16.msra.mxu0 %v741_v11  ;;  %678 = vmatpush3.bf16.msra.mxu1 %v749_v17 }
  0x75   :  { %659 = vmatprep.subr.bf16.mxu0 %v914_v0  ;;  %679 = vmatprep.subr.bf16.mxu1 %v914_v0 }
  0x78   :  { %660 = vmatpush3.bf16.msra.mxu0 %v742_v13  ;;  %680 = vmatpush3.bf16.msra.mxu1 %v750_v18 }
  0x79   :  { %685 = vmatprep.subr.bf16.mxu0 %v914_v0  ;;  %705 = vmatprep.subr.bf16.mxu1 %v914_v0 }
  0x7b   :  { %662 = vmatmul.mubr.bf16.vlgmr.msra.gmra.mrb[0].mxu0 %v102_v16 }
  0x7c   :  { %701 = vmatprep.mubr.msk.bf16.mxu0 %vm915_vm0, %v914_v0  ;;  %686 = vmatpush3.bf16.msra.mxu0 %v751_v19 }
  0x7d   :  { %687 = vmatprep.subr.bf16.mxu0 %v914_v0 }
  0x80   :  { %688 = vmatpush3.bf16.msra.mxu0 %v752_v20 }
  0x81   :  { %689 = vmatprep.subr.bf16.mxu0 %v914_v0 }
  0x84   :  { %690 = vmatpush3.bf16.msra.mxu0 %v753_v21 }
  0x85   :  { %691 = vmatprep.subr.bf16.mxu0 %v914_v0 }
  0x88   :  { %692 = vmatpush3.bf16.msra.mxu0 %v754_v22 }
  0x89   :  { %693 = vmatprep.subr.bf16.mxu0 %v914_v0 }
  0x8c   :  { %694 = vmatpush3.bf16.msra.mxu0 %v755_v23 }
  0x8d   :  { %695 = vmatprep.subr.bf16.mxu0 %v914_v0 }
  0x90   :  { %696 = vmatpush3.bf16.msra.mxu0 %v756_v24 }
  0x91   :  { %697 = vmatprep.subr.bf16.mxu0 %v914_v0 }
  0x94   :  { %698 = vmatpush3.bf16.msra.mxu0 %v757_v32 }
  0x95   :  { %699 = vmatprep.subr.bf16.mxu0 %v914_v0 }
  0x98   :  { %700 = vmatpush3.bf16.msra.mxu0 %v758_v33 }
 0x14e   :  { %v201_v26 = vpop.f32.mrb[0].mxu0 }
 0x14f   :  { %v213_v27 = vadd.f32 %v581_v25, %v201_v26  ;;  %v663_v28 = vpop.f32.mrb[1].mxu0 }
 0x150   :  { %v204_v29 = vpop.f32.mrb[2].mxu0 }
 0x151   :  { %v215_v30 = vpack.c.bf16 %v213_v27, %v213_v27  ;;  %v664_v31 = vpop.f32.mrb[3].mxu0 }
 0x153   :  { %682 = vmatmul.mubr.bf16.vlgmr.msra.gmra.mrb[0].mxu1 %v215_v30 }
 0x154   :  { %721 = vmatprep.mubr.msk.bf16.mxu1 %vm915_vm0, %v914_v0  ;;  %706 = vmatpush3.bf16.msra.mxu1 %v759_v34 }
 0x155   :  { %707 = vmatprep.subr.bf16.mxu1 %v914_v0 }
 0x158   :  { %708 = vmatpush3.bf16.msra.mxu1 %v760_v35 }
 0x159   :  { %709 = vmatprep.subr.bf16.mxu1 %v914_v0 }
 0x15c   :  { %710 = vmatpush3.bf16.msra.mxu1 %v761_v36 }
 0x15d   :  { %711 = vmatprep.subr.bf16.mxu1 %v914_v0 }
 0x160   :  { %712 = vmatpush3.bf16.msra.mxu1 %v762_v37 }
 0x161   :  { %713 = vmatprep.subr.bf16.mxu1 %v914_v0 }
 0x164   :  { %714 = vmatpush3.bf16.msra.mxu1 %v763_v38 }
 0x165   :  { %715 = vmatprep.subr.bf16.mxu1 %v914_v0 }
 0x168   :  { %716 = vmatpush3.bf16.msra.mxu1 %v764_v39 }
 0x169   :  { %717 = vmatprep.subr.bf16.mxu1 %v914_v0 }
 0x16c   :  { %718 = vmatpush3.bf16.msra.mxu1 %v765_v48 }
 0x16d   :  { %719 = vmatprep.subr.bf16.mxu1 %v914_v0 }
 0x170   :  { %720 = vmatpush3.bf16.msra.mxu1 %v766_v49 }
 0x226   :  { %v314_v41 = vpop.f32.mrb[0].mxu1 }
 0x227   :  { %v326_v42 = vadd.f32 %v590_v40, %v314_v41  ;;  %v683_v43 = vpop.f32.mrb[1].mxu1 }
 0x228   :  { %v317_v44 = vpop.f32.mrb[2].mxu1 }
 0x229   :  { %v327_v45 = vmax.f32 %v326_v42, 0.0  ;;  %v684_v46 = vpop.f32.mrb[3].mxu1 }
 0x22b   :  { %v329_v47 = vpack.c.bf16 %v327_v45, %v327_v45 }
 0x22d   :  { %702 = vmatmul.mubr.bf16.vlgmr.msra.gmra.mrb[4].mxu0 %v329_v47 }
 0x300   :  { %v428_v51 = vpop.f32.mrb[4].mxu0 }
 0x301   :  { %v440_v52 = vadd.f32 %v599_v50, %v428_v51  ;;  %v703_v53 = vpop.f32.mrb[5].mxu0 }
 0x302   :  { %v431_v54 = vpop.f32.mrb[6].mxu0 }
 0x303   :  { %v441_v55 = vmax.f32 %v440_v52, 0.0  ;;  %v704_v56 = vpop.f32.mrb[7].mxu0 }
 0x305   :  { %v443_v57 = vpack.c.bf16 %v441_v55, %v441_v55 }
 0x307   :  { %722 = vmatmul.mubr.bf16.vlgmr.msra.gmra.mrb[4].mxu1 %v443_v57 }
 0x3da   :  { %v542_v59 = vpop.f32.mrb[4].mxu1 }
 0x3db   :  { %v554_v60 = vadd.f32 %v608_v58, %v542_v59  ;;  %v723_v61 = vpop.f32.mrb[5].mxu1 }
 0x3dc   :  { %v545_v62 = vpop.f32.mrb[6].mxu1 }
 0x3dd   :  { %555 = vst [vmem:[#allocation11] sm:$0xff] %v554_v60  ;;  %v724_v63 = vpop.f32.mrb[7].mxu1 }
 0x3de   :  { %888 = shalt.err (!%p885_p2)
}
 0x3df   :  { %s889_s8 = scalar_lea.hbm %s1112_s9, 128 }
 0x3e0   :  { %p890_p3 = scmp.ne.s32.totalorder %s1112_s9, %s889_s8  ;;  %p893_p4 = scmp.lt.u32.totalorder %s889_s8, %s1112_s9 }
 0x3e2   :  { %p895_p5 = pnand %p893_p4, %p890_p3 }
 0x3e4   :  { %898 = shalt.err (!%p895_p5)
}
 0x3e5   :  { %565 = dma.vmem_to_hbm [thread:$0]  %s563_s12, 128, %s1112_s9, [#allocation4]  }
 0x3e6   :  { %905 = dma.done.wait [#allocation4], 128  }
 0x3e7   :  { %906 = vsyncadd [#allocation4], 4294967168 }
 0x3e8   :  { %569 = vsyncpa [#allocation3], 1 }
 0x3e9   :  { %570 = vsyncpa [#allocation6], 1 }
 0x3ea   :  { %571 = vsyncpa [#allocation9], 1 }
 0x3eb   :  { %572 = vsyncpa [#allocation4], 1 }

</bundles_post_ra>
